<compile_context>
chip_gen: v5e
topology: v5e:2x2
jax: 0.10.0
libtpu: 0.0.40
codegen_flags: <defaults>
</compile_context>

<pallas_src>
import jax
import jax.numpy as jnp
from jax.experimental import pallas as pl
from jax.experimental.pallas import tpu as pltpu

IN_SIZE = 10
OUT_SIZE = 1


def linear_kernel(xt_ref, w_ref, o_ref):
    # xt_ref: (K, B) activations, transposed so batch sits on the lane axis.
    # w_ref : (K, 1) weight column (broadcast across lanes).
    # o_ref : (1, B) lane-dense output row.
    prod = xt_ref[...] * w_ref[...]                     # VPU broadcast multiply
    o_ref[...] = jnp.sum(prod, axis=0, keepdims=True)   # sublane reduce -> (1, B)


@jax.jit
def linear_forward(x, weight):
    """x: (B, in_features) f32; weight: (out_features, in_features) f32 (PyTorch layout)."""
    B, K = x.shape
    N, K2 = weight.shape
    assert K == K2
    assert N == 1, "VPU formulation specialised for out_size == 1 (module spec)"
    # TODO(synk): for out_size > 1 / large K, switch to an MXU tile matmul
    # (bf16 inputs, f32 accum) gridded over the batch axis ("parallel" for v7x 2-TC).

    xt = x.T                      # (K, B)  — fused under jit, no separate dispatch
    w_col = weight.reshape(K, N)  # (K, 1)  — PyTorch weight is already (1, K); pure reshape

    out_row = pl.pallas_call(
        linear_kernel,
        out_shape=jax.ShapeDtypeStruct((N, B), jnp.float32),
        in_specs=[
            pl.BlockSpec(memory_space=pltpu.MemorySpace.VMEM),
            pl.BlockSpec(memory_space=pltpu.MemorySpace.VMEM),
        ],
        out_specs=pl.BlockSpec(memory_space=pltpu.MemorySpace.VMEM),
    )(xt, w_col)                  # (1, B), batch on the lane axis

    return out_row.reshape(B, N)  # (B, 1) — module's output layout


if __name__ == "__main__":
    key = jax.random.PRNGKey(0)
    kx, kw = jax.random.split(key)

    batch = 8
    x = jax.random.normal(kx, (batch, IN_SIZE), dtype=jnp.float32)

    # Deterministic parameter init (mimics nn.Linear's uniform(-1/sqrt(in), 1/sqrt(in)))
    bound = 1.0 / (IN_SIZE ** 0.5)
    weight = jax.random.uniform(
        kw, (OUT_SIZE, IN_SIZE), dtype=jnp.float32, minval=-bound, maxval=bound
    )

    y = linear_forward(x, weight)
    y = jax.block_until_ready(y)

    # Sanity check against plain-JAX reference
    y_ref = x @ weight.T
    assert y.shape == (batch, OUT_SIZE)
    assert jnp.allclose(y, y_ref, atol=1e-5, rtol=1e-5)

    print("KERNEL_OK")
</pallas_src>

<mosaic_0001>
module attributes {stable_mosaic.version = 11 : i64} {
  func.func @linear_kernel(%arg0: memref<10x8xf32, #tpu.memory_space<vmem>>, %arg1: memref<10x1xf32, #tpu.memory_space<vmem>>, %arg2: memref<1x8xf32, #tpu.memory_space<vmem>>) attributes {dimension_semantics = [], scalar_prefetch = 0 : i64, scratch_operands = 0 : i64, tpu.core_type = #tpu.core_type<tc>} {
    %c0 = arith.constant 0 : index
    %c0_0 = arith.constant 0 : index
    %0 = vector.load %arg0[%c0, %c0_0] : memref<10x8xf32, #tpu.memory_space<vmem>>, vector<10x8xf32>
    %c0_1 = arith.constant 0 : index
    %c0_2 = arith.constant 0 : index
    %1 = vector.load %arg1[%c0_1, %c0_2] : memref<10x1xf32, #tpu.memory_space<vmem>>, vector<10x1xf32>
    %2 = vector.broadcast %1 : vector<10x1xf32> to vector<10x8xf32>
    %3 = arith.mulf %0, %2 : vector<10x8xf32>
    %cst = arith.constant dense<0.000000e+00> : vector<8xf32>
    %4 = vector.multi_reduction <add>, %3, %cst [0] : vector<10x8xf32> to vector<8xf32>
    %5 = vector.shape_cast %4 : vector<8xf32> to vector<1x8xf32>
    %c0_3 = arith.constant 0 : index
    %c0_4 = arith.constant 0 : index
    %6 = vector.load %arg2[%c0_3, %c0_4] : memref<1x8xf32, #tpu.memory_space<vmem>>, vector<1x8xf32>
    tpu.vector_store %arg2[%c0_3, %c0_4], %5 {strides = array<i32>} : memref<1x8xf32, #tpu.memory_space<vmem>>, vector<1x8xf32>,
    return
  }
}

</mosaic_0001>

<bundles_post_ra>
// kernel: linear_forward.1
= control target key start
LH: loop header
LB: loop body
LE: loop exit
PB: predicated region body
PF: predicated region fallthrough
CT: control target
= control target key end

     0   :  { %v86_v1 = vmov 0   ;;  %s118_s0 = inlined_call_operand.vmem [shape: f32[10,8], index: 0, kind: input, shape index: {}]   ;;  %s119_s1 = inlined_call_operand.vmem [shape: f32[10,1], index: 1, kind: input, shape index: {}]   ;;  %s120_s2 = inlined_call_operand.hbm [shape: f32[1,8], index: 2, kind: output, shape index: {}]  }
   0x1   :  { %v14_v0 = vld [vmem:[%s119_s1] sm:$0xff]  ;;  %59 = vset.pattern.permute.xlu0 %v86_v1 }
   0x2   :  { %7 = vsyncpa [#allocation3], 0  ;;  %18 = vperm.xlu0 %59, %v14_v0   ;;  %v15_v2 = vld [vmem:[%s119_s1 + $0x8] sm:$0x3]  ;;  %v12_v4 = vld [vmem:[%s118_s0] sm:$0xff]  ;;  %vm28_vm0 = vcmask 64512  }
   0x3   :  { %v13_v5 = vld [vmem:[%s118_s0 + $0x8] sm:$0x3]  ;;  %vm30_vm1 = vcmask 58368   ;;  %s87_s1 = smov [#allocation2]   ;;  %s48_s20 = sshll.u32 %s120_s2, 4  ;;  %vm39_vm2 = vcmask 57344   ;;  %s49_s20 = int_to_ptr.hbm [resolvable:$true] %s48_s20 }
   0x4   :  { %s46_s17 = sshll.u32 %s87_s1, 4  ;;  %s47_s17 = int_to_ptr.vmem [resolvable:$true] %s46_s17 }
   0xa   :  { %23 = vperm.xlu0 %59, %v15_v2  }
  0x74   :  { %v19_v3 = vpop.permute.xlu0 %18 }
  0x75   :  { %v26_v6 = vmul.f32 %v19_v3, %v12_v4 }
  0x77   :  { %v29_v9 = vsel %vm28_vm0, %v26_v6, 0.0 }
  0x7c   :  { %v24_v7 = vpop.permute.xlu0 %23 }
  0x7d   :  { %v27_v8 = vmul.f32 %v24_v7, %v13_v5 }
  0x7f   :  { %v31_v10 = vsel %vm30_vm1, %v27_v8, 0.0 }
  0x80   :  { %v32_v11 = vadd.f32 %v31_v10, %v29_v9 }
  0x82   :  { %v33_v12 = vrot.slane %v32_v11, 4 }
  0x84   :  { %v34_v13 = vadd.f32 %v33_v12, %v32_v11 }
  0x86   :  { %v35_v14 = vrot.slane %v34_v13, 2 }
  0x88   :  { %v36_v15 = vadd.f32 %v35_v14, %v34_v13 }
  0x8a   :  { %v37_v16 = vrot.slane %v36_v15, 1 }
  0x8c   :  { %v38_v17 = vadd.f32 %v37_v16, %v36_v15 }
  0x8e   :  { %40 = vst.msk [vmem:[#allocation2] sm:$0x1] %vm39_vm2, %v38_v17 }
  0x8f   :  { %51 = dma.vmem_to_hbm [thread:$0]  %s47_s17, 16, %s49_s20, [#allocation3]  }
  0x90   :  { %84 = dma.done.wait [#allocation3], 16  }
  0x91   :  { %85 = vsyncadd [#allocation3], 4294967280 }
  0x92   :  { %56 = vsyncpa [#allocation3], 1 }

</bundles_post_ra>
